<compile_context>
chip_gen: v6e
topology: v6e:2x2x1
jax: 0.10.0
libtpu: 0.0.40
codegen_flags: <defaults>
</compile_context>

<pallas_src>
import jax
import jax.numpy as jnp
from jax.experimental import pallas as pl
from jax.experimental.pallas import tpu as pltpu

DEFAULT_TB = 4096     # batch-tile cap (rows); review range 4096-8192
_MIN_SPLIT = 2048     # below this, one grid step beats splitting across steps


def _round_up(n, m):
    return ((n + m - 1) // m) * m


def _pick_tb(batch, cap=DEFAULT_TB):
    """Batch tile: amortize per-step cost, keep >=2 grid steps when possible."""
    if batch <= cap:
        if batch >= _MIN_SPLIT:
            # Split roughly in half so both TCs get work on v7x (megacore).
            return min(cap, _round_up((batch + 1) // 2, 8))
        return batch                      # single full-array block, no padding
    return cap


def _mlp_kernel(x_ref, w1_ref, b1_ref, w2_ref, b2_ref, w3_ref, b3_ref, o_ref):
    # x_ref: (TB, 40) f32 — cast to bf16 in-kernel (rides the VPU, saves an
    # un-fused XLA cast pass over x in HBM). Weights bf16, biases f32.
    x = x_ref[...].astype(jnp.bfloat16)

    # Layer 1: (TB,40)@(40,64) -> f32 acc, +bias, ReLU.
    h1 = jnp.dot(x, w1_ref[...], preferred_element_type=jnp.float32)
    h1 = jnp.maximum(h1 + b1_ref[...], 0.0)
    # Dropout(0.3) -> identity at inference.

    # Layer 2: (TB,64)@(64,32) -> f32 acc, +bias, ReLU.
    h2 = jnp.dot(h1.astype(jnp.bfloat16), w2_ref[...],
                 preferred_element_type=jnp.float32)
    h2 = jnp.maximum(h2 + b2_ref[...], 0.0)
    # Dropout(0.3) -> identity at inference.

    # Layer 3: (TB,32)@(32,C) -> f32 acc, +bias. Narrow (TB, C) store: the HBM
    # destination block is contiguous, and writing only C columns cuts output
    # HBM traffic ~32x vs. a 128-lane-padded slab.
    out = jnp.dot(h2.astype(jnp.bfloat16), w3_ref[...],
                  preferred_element_type=jnp.float32)
    o_ref[...] = (out + b3_ref[...]).astype(o_ref.dtype)


def voice_classifier_forward(x, params, *, tb=DEFAULT_TB):
    """x: (B, 40) float32. params: dict of w1,b1,w2,b2,w3,b3 (float32)."""
    B, K = x.shape
    C = params["w3"].shape[1]

    # Tiny weights: cast to bf16 (streamed once, VMEM-resident); biases f32.
    w1b = params["w1"].astype(jnp.bfloat16)
    w2b = params["w2"].astype(jnp.bfloat16)
    w3b = params["w3"].astype(jnp.bfloat16)
    b1f = params["b1"].astype(jnp.float32)
    b2f = params["b2"].astype(jnp.float32)
    b3f = params["b3"].astype(jnp.float32)

    TB = _pick_tb(B, tb)
    grid = (pl.cdiv(B, TB),)   # ragged last block handled by Pallas masking

    # Weights / biases: full-array block, constant index_map -> VMEM-resident.
    def resident(a):
        return pl.BlockSpec(a.shape, lambda i: (0,) * a.ndim)

    out = pl.pallas_call(
        _mlp_kernel,
        out_shape=jax.ShapeDtypeStruct((B, C), jnp.float32),
        grid=grid,
        in_specs=[
            pl.BlockSpec((TB, K), lambda i: (i, 0)),   # x: tiled over batch
            resident(w1b), resident(b1f),
            resident(w2b), resident(b2f),
            resident(w3b), resident(b3f),
        ],
        out_specs=pl.BlockSpec((TB, C), lambda i: (i, 0)),
        compiler_params=pltpu.CompilerParams(
            dimension_semantics=("parallel",),   # megacore sharding on v7x
            vmem_limit_bytes=32 << 20,           # safe on v5e/v6e/v7x at TB<=4096
        ),
    )(x, w1b, b1f, w2b, b2f, w3b, b3f)
    return out


def init_params(key, num_classes):
    """Deterministic init (shapes match nn.Linear(40,64)/(64,32)/(32,C))."""
    ks = jax.random.split(key, 6)

    def lin(kw, kb, fan_in, fan_out):
        bound = 1.0 / jnp.sqrt(fan_in)
        w = jax.random.uniform(kw, (fan_in, fan_out), jnp.float32, -bound, bound)
        b = jax.random.uniform(kb, (1, fan_out), jnp.float32, -bound, bound)
        return w, b

    w1, b1 = lin(ks[0], ks[1], 40, 64)
    w2, b2 = lin(ks[2], ks[3], 64, 32)
    w3, b3 = lin(ks[4], ks[5], 32, num_classes)
    return {"w1": w1, "b1": b1, "w2": w2, "b2": b2, "w3": w3, "b3": b3}


def _reference_bf16(x, p):
    """Mirrors the kernel's bf16-stream / f32-accumulate math exactly."""
    xb = x.astype(jnp.bfloat16)
    h1 = jnp.maximum(
        jnp.dot(xb, p["w1"].astype(jnp.bfloat16),
                preferred_element_type=jnp.float32) + p["b1"], 0.0)
    h2 = jnp.maximum(
        jnp.dot(h1.astype(jnp.bfloat16), p["w2"].astype(jnp.bfloat16),
                preferred_element_type=jnp.float32) + p["b2"], 0.0)
    return jnp.dot(h2.astype(jnp.bfloat16), p["w3"].astype(jnp.bfloat16),
                   preferred_element_type=jnp.float32) + p["b3"]


def _reference_f32(x, p):
    h1 = jnp.maximum(x @ p["w1"] + p["b1"], 0.0)
    h2 = jnp.maximum(h1 @ p["w2"] + p["b2"], 0.0)
    return h2 @ p["w3"] + p["b3"]


if __name__ == "__main__":
    key = jax.random.PRNGKey(0)
    k_x, k_p, k_x2 = jax.random.split(key, 3)

    num_classes = 4
    params = init_params(k_p, num_classes)

    # Case 1: small batch -> single grid step, full-array block.
    x = jax.random.normal(k_x, (8, 40), jnp.float32)
    out = jax.block_until_ready(voice_classifier_forward(x, params))
    assert out.shape == (8, num_classes)
    ref = _reference_bf16(x, params)
    assert jnp.allclose(out, ref, atol=2e-3, rtol=2e-3), float(
        jnp.max(jnp.abs(out - ref)))
    # Loose sanity check against full-f32 math (bf16 streaming noise only).
    assert jnp.allclose(out, _reference_f32(x, params), atol=5e-2, rtol=5e-2)

    # Case 2: multi-step grid with a ragged last block (no wrapper pad/slice).
    x2 = jax.random.normal(k_x2, (50, 40), jnp.float32)
    out2 = jax.block_until_ready(voice_classifier_forward(x2, params, tb=16))
    assert out2.shape == (50, num_classes)
    ref2 = _reference_bf16(x2, params)
    assert jnp.allclose(out2, ref2, atol=2e-3, rtol=2e-3), float(
        jnp.max(jnp.abs(out2 - ref2)))

    print("KERNEL_OK")
</pallas_src>

<mosaic_0001>
module attributes {stable_mosaic.version = 11 : i64} {
  func.func @_mlp_kernel(%arg0: i32, %arg1: memref<8x40xf32, #tpu.memory_space<vmem>>, %arg2: memref<40x64xbf16, #tpu.memory_space<vmem>>, %arg3: memref<1x64xf32, #tpu.memory_space<vmem>>, %arg4: memref<64x32xbf16, #tpu.memory_space<vmem>>, %arg5: memref<1x32xf32, #tpu.memory_space<vmem>>, %arg6: memref<32x4xbf16, #tpu.memory_space<vmem>>, %arg7: memref<1x4xf32, #tpu.memory_space<vmem>>, %arg8: memref<8x4xf32, #tpu.memory_space<vmem>>) attributes {dimension_semantics = [#tpu.dimension_semantics<parallel>], iteration_bounds = array<i64: 1>, scalar_prefetch = 0 : i64, scratch_operands = 0 : i64, tpu.core_type = #tpu.core_type<tc>, window_params = [{transform_indices = @transform_0, window_bounds = array<i64: 8, 40>}, {pipeline_mode = #tpu.pipeline_mode<synchronous>, transform_indices = @transform_1, window_bounds = array<i64: 40, 64>}, {pipeline_mode = #tpu.pipeline_mode<synchronous>, transform_indices = @transform_2, window_bounds = array<i64: 1, 64>}, {pipeline_mode = #tpu.pipeline_mode<synchronous>, transform_indices = @transform_3, window_bounds = array<i64: 64, 32>}, {pipeline_mode = #tpu.pipeline_mode<synchronous>, transform_indices = @transform_4, window_bounds = array<i64: 1, 32>}, {pipeline_mode = #tpu.pipeline_mode<synchronous>, transform_indices = @transform_5, window_bounds = array<i64: 32, 4>}, {pipeline_mode = #tpu.pipeline_mode<synchronous>, transform_indices = @transform_6, window_bounds = array<i64: 1, 4>}, {transform_indices = @transform_7, window_bounds = array<i64: 8, 4>}]} {
    %c0 = arith.constant 0 : index
    %c0_0 = arith.constant 0 : index
    %0 = vector.load %arg1[%c0, %c0_0] : memref<8x40xf32, #tpu.memory_space<vmem>>, vector<8x40xf32>
    %1 = arith.truncf %0 : vector<8x40xf32> to vector<8x40xbf16>
    %c0_1 = arith.constant 0 : index
    %c0_2 = arith.constant 0 : index
    %2 = vector.load %arg2[%c0_1, %c0_2] : memref<40x64xbf16, #tpu.memory_space<vmem>>, vector<40x64xbf16>
    %cst = arith.constant dense<0.000000e+00> : vector<8x64xf32>
    %3 = tpu.matmul %1, %2, %cst {dimension_numbers = #tpu.dot_dimension_numbers<[1], [0], [0], [1], [0, 0, 1, 1], [], []>} : vector<8x40xbf16>, vector<40x64xbf16>, vector<8x64xf32> -> vector<8x64xf32>
    %c0_3 = arith.constant 0 : index
    %c0_4 = arith.constant 0 : index
    %4 = vector.load %arg3[%c0_3, %c0_4] : memref<1x64xf32, #tpu.memory_space<vmem>>, vector<1x64xf32>
    %5 = vector.broadcast %4 : vector<1x64xf32> to vector<8x64xf32>
    %6 = arith.addf %3, %5 : vector<8x64xf32>
    %cst_5 = arith.constant 0.000000e+00 : f32
    %7 = vector.broadcast %cst_5 : f32 to vector<8x64xf32>
    %8 = arith.maximumf %6, %7 : vector<8x64xf32>
    %9 = arith.truncf %8 : vector<8x64xf32> to vector<8x64xbf16>
    %c0_6 = arith.constant 0 : index
    %c0_7 = arith.constant 0 : index
    %10 = vector.load %arg4[%c0_6, %c0_7] : memref<64x32xbf16, #tpu.memory_space<vmem>>, vector<64x32xbf16>
    %cst_8 = arith.constant dense<0.000000e+00> : vector<8x32xf32>
    %11 = tpu.matmul %9, %10, %cst_8 {dimension_numbers = #tpu.dot_dimension_numbers<[1], [0], [0], [1], [0, 0, 1, 1], [], []>} : vector<8x64xbf16>, vector<64x32xbf16>, vector<8x32xf32> -> vector<8x32xf32>
    %c0_9 = arith.constant 0 : index
    %c0_10 = arith.constant 0 : index
    %12 = vector.load %arg5[%c0_9, %c0_10] : memref<1x32xf32, #tpu.memory_space<vmem>>, vector<1x32xf32>
    %13 = vector.broadcast %12 : vector<1x32xf32> to vector<8x32xf32>
    %14 = arith.addf %11, %13 : vector<8x32xf32>
    %cst_11 = arith.constant 0.000000e+00 : f32
    %15 = vector.broadcast %cst_11 : f32 to vector<8x32xf32>
    %16 = arith.maximumf %14, %15 : vector<8x32xf32>
    %17 = arith.truncf %16 : vector<8x32xf32> to vector<8x32xbf16>
    %c0_12 = arith.constant 0 : index
    %c0_13 = arith.constant 0 : index
    %18 = vector.load %arg6[%c0_12, %c0_13] : memref<32x4xbf16, #tpu.memory_space<vmem>>, vector<32x4xbf16>
    %cst_14 = arith.constant dense<0.000000e+00> : vector<8x4xf32>
    %19 = tpu.matmul %17, %18, %cst_14 {dimension_numbers = #tpu.dot_dimension_numbers<[1], [0], [0], [1], [0, 0, 1, 1], [], []>} : vector<8x32xbf16>, vector<32x4xbf16>, vector<8x4xf32> -> vector<8x4xf32>
    %c0_15 = arith.constant 0 : index
    %c0_16 = arith.constant 0 : index
    %20 = vector.load %arg7[%c0_15, %c0_16] : memref<1x4xf32, #tpu.memory_space<vmem>>, vector<1x4xf32>
    %21 = vector.broadcast %20 : vector<1x4xf32> to vector<8x4xf32>
    %22 = arith.addf %19, %21 : vector<8x4xf32>
    %c0_17 = arith.constant 0 : index
    %c0_18 = arith.constant 0 : index
    %23 = vector.load %arg8[%c0_17, %c0_18] : memref<8x4xf32, #tpu.memory_space<vmem>>, vector<8x4xf32>
    tpu.vector_store %arg8[%c0_17, %c0_18], %22 {strides = array<i32>} : memref<8x4xf32, #tpu.memory_space<vmem>>, vector<8x4xf32>,
    return
  }
  func.func @transform_0(%arg0: i32) -> (i32, i32) {
    %c0_i32 = arith.constant 0 : i32
    %c0_i32_0 = arith.constant 0 : i32
    return %arg0, %c0_i32 : i32, i32
  }
  func.func @transform_1(%arg0: i32) -> (i32, i32) {
    %c0_i32 = arith.constant 0 : i32
    %c0_i32_0 = arith.constant 0 : i32
    %c0_i32_1 = arith.constant 0 : i32
    return %c0_i32, %c0_i32_0 : i32, i32
  }
  func.func @transform_2(%arg0: i32) -> (i32, i32) {
    %c0_i32 = arith.constant 0 : i32
    %c0_i32_0 = arith.constant 0 : i32
    %c0_i32_1 = arith.constant 0 : i32
    return %c0_i32, %c0_i32_0 : i32, i32
  }
  func.func @transform_3(%arg0: i32) -> (i32, i32) {
    %c0_i32 = arith.constant 0 : i32
    %c0_i32_0 = arith.constant 0 : i32
    %c0_i32_1 = arith.constant 0 : i32
    return %c0_i32, %c0_i32_0 : i32, i32
  }
  func.func @transform_4(%arg0: i32) -> (i32, i32) {
    %c0_i32 = arith.constant 0 : i32
    %c0_i32_0 = arith.constant 0 : i32
    %c0_i32_1 = arith.constant 0 : i32
    return %c0_i32, %c0_i32_0 : i32, i32
  }
  func.func @transform_5(%arg0: i32) -> (i32, i32) {
    %c0_i32 = arith.constant 0 : i32
    %c0_i32_0 = arith.constant 0 : i32
    %c0_i32_1 = arith.constant 0 : i32
    return %c0_i32, %c0_i32_0 : i32, i32
  }
  func.func @transform_6(%arg0: i32) -> (i32, i32) {
    %c0_i32 = arith.constant 0 : i32
    %c0_i32_0 = arith.constant 0 : i32
    %c0_i32_1 = arith.constant 0 : i32
    return %c0_i32, %c0_i32_0 : i32, i32
  }
  func.func @transform_7(%arg0: i32) -> (i32, i32) {
    %c0_i32 = arith.constant 0 : i32
    %c0_i32_0 = arith.constant 0 : i32
    return %arg0, %c0_i32 : i32, i32
  }
}

</mosaic_0001>

<bundles_post_ra>
// kernel: tpu_custom_call.1
= control target key start
LH: loop header
LB: loop body
LE: loop exit
PB: predicated region body
PF: predicated region fallthrough
CT: control target
= control target key end

     0   :  { %vm60_vm0 = vcmask 1043456   ;;  %v332_v0 = vmov 0.0   ;;  %vm333_vm1 = vmmov 0   ;;  %vm56_vm2 = vcmask 326656   ;;  %s419_s1 = inlined_call_operand.vmem [shape: bf16[40,64], index: 1, kind: input, shape index: {}]   ;;  %s420_s3 = inlined_call_operand.vmem [shape: bf16[64,32], index: 3, kind: input, shape index: {}]   ;;  %s421_s0 = inlined_call_operand.vmem [shape: f32[8,40], index: 0, kind: input, shape index: {}]   ;;  %s422_s5 = inlined_call_operand.vmem [shape: bf16[32,4], index: 5, kind: input, shape index: {}]   ;;  %s423_s2 = inlined_call_operand.vmem [shape: f32[1,64], index: 2, kind: input, shape index: {}]   ;;  %s424_s4 = inlined_call_operand.vmem [shape: f32[1,32], index: 4, kind: input, shape index: {}]   ;;  %s425_s6 = inlined_call_operand.vmem [shape: f32[1,4], index: 6, kind: input, shape index: {}]   ;;  %s426_s7 = inlined_call_operand.vmem [shape: f32[8,4], index: 7, kind: output, shape index: {}]  }
   0x1   :  { %291 = vmatprep.subr.bf16.mxu0 %v332_v0  ;;  %v323_v1 = vld [vmem:[%s419_s1 + $0x10] ss:$0 sps:$4 sm:$0xff]   ;;  %297 = vmatprep.mubr.msk.bf16.mxu0 %vm333_vm1, %v332_v0  ;;  %v324_v3 = vld [vmem:[%s419_s1 + $0x8] sm:$0xff]   ;;  %v326_v4 = vld [vmem:[%s420_s3 + $0x18] sm:$0xff]   ;;  %vm145_vm3 = vcmask 523264   ;;  %vm214_vm4 = vcmask 261120  }
   0x2   :  { %301 = vmatprep.subr.bf16.mxu1 %v332_v0  ;;  %309 = vmatprep.mubr.msk.bf16.mxu1 %vm333_vm1, %v332_v0  ;;  %v62_v2 = vsel %vm60_vm0, %v323_v1, 0  ;;  %v327_v5 = vld [vmem:[%s420_s3 + $0x10] sm:$0xff]   ;;  %v325_v6 = vld [vmem:[%s419_s1] sm:$0xff]   ;;  %v328_v9 = vld [vmem:[%s420_s3 + $0x8] sm:$0xff]   ;;  %vm258_vm5 = vcmask 31744  }
   0x3   :  { %292 = vmatpush3.bf16.msra.mxu0 %v62_v2  ;;  %302 = vmatpush3.bf16.msra.mxu1 %v326_v4  ;;  %v27_v7 = vld [vmem:[%s421_s0] sm:$0xff]  ;;  %v330_v11 = vld [vmem:[%s422_s5 + $0x8] sm:$0xff]  }
   0x4   :  { %293 = vmatprep.subr.bf16.mxu0 %v332_v0  ;;  %303 = vmatprep.subr.bf16.mxu1 %v332_v0  ;;  %v28_v8 = vpack.c.bf16 %v27_v7, %v27_v7  ;;  %v329_v10 = vld [vmem:[%s420_s3] sm:$0xff]  }
   0x5   :  { %v264_v12 = vld [vmem:[%s423_s2] ss:$0 sm:$0xff] }
   0x6   :  { %v331_v20 = vld [vmem:[%s422_s5] sm:$0xff]  }
   0x7   :  { %294 = vmatpush3.bf16.msra.mxu0 %v324_v3  ;;  %304 = vmatpush3.bf16.msra.mxu1 %v327_v5  ;;  %v269_v21 = vld [vmem:[%s424_s4] ss:$0 sm:$0xff] }
   0x8   :  { %295 = vmatprep.subr.bf16.mxu0 %v332_v0  ;;  %305 = vmatprep.subr.bf16.mxu1 %v332_v0  ;;  %v275_v29 = vld [vmem:[%s425_s6] ss:$0 sm:$0xff] }
   0xb   :  { %296 = vmatpush3.bf16.msra.mxu0 %v325_v6  ;;  %306 = vmatpush3.bf16.msra.mxu1 %v328_v9 }
   0xc   :  { %313 = vmatprep.subr.bf16.mxu0 %v332_v0  ;;  %307 = vmatprep.subr.bf16.mxu1 %v332_v0 }
   0xe   :  { %298 = vmatmul.mubr.msk.bf16.vlgmr.msra.gmra.mxu0 %vm56_vm2, %v28_v8 }
   0xf   :  { %317 = vmatprep.mubr.msk.bf16.mxu0 %vm333_vm1, %v332_v0  ;;  %308 = vmatpush3.bf16.msra.mxu1 %v329_v10 }
  0x10   :  { %314 = vmatpush3.bf16.msra.mxu0 %v330_v11 }
  0x11   :  { %315 = vmatprep.subr.bf16.mxu0 %v332_v0 }
  0x14   :  { %316 = vmatpush3.bf16.msra.mxu0 %v331_v20 }
  0xce   :  { %v98_v13 = vpop.f32.mrf.mxu0 }
  0xcf   :  { %v99_v14 = vadd.f32 %v264_v12, %v98_v13 }
  0xd0   :  { %v299_v15 = vpop.f32.mrf.mxu0 }
  0xd1   :  { %v104_v16 = vmax.f32 %v99_v14, 0.0 }
  0xd2   :  { %v101_v17 = vpop.f32.mrf.mxu0 }
  0xd3   :  { %v105_v18 = vpack.c.bf16 %v104_v16, %v104_v16 }
  0xd4   :  { %v300_v19 = vpop.f32.mrf.mxu0 }
  0xd5   :  { %310 = vmatmul.mubr.msk.bf16.vlgmr.msra.gmra.mxu1 %vm145_vm3, %v105_v18 }
 0x195   :  { %v183_v22 = vpop.f32.mrf.mxu1 }
 0x196   :  { %v184_v23 = vadd.f32 %v269_v21, %v183_v22 }
 0x197   :  { %v311_v24 = vpop.f32.mrf.mxu1 }
 0x198   :  { %v189_v25 = vmax.f32 %v184_v23, 0.0 }
 0x199   :  { %v186_v26 = vpop.f32.mrf.mxu1 }
 0x19a   :  { %v190_v27 = vpack.c.bf16 %v189_v25, %v189_v25 }
 0x19b   :  { %v312_v28 = vpop.f32.mrf.mxu1 }
 0x19c   :  { %318 = vmatmul.mubr.msk.bf16.vlgmr.msra.gmra.mxu0 %vm214_vm4, %v190_v27 }
 0x25c   :  { %v252_v30 = vpop.f32.mrf.mxu0 }
 0x25d   :  { %v253_v31 = vadd.f32 %v275_v29, %v252_v30 }
 0x25e   :  { %v319_v32 = vpop.f32.mrf.mxu0 }
 0x25f   :  { %259 = vst.msk [vmem:[%s426_s7] sm:$0xff] %vm258_vm5, %v253_v31 }
 0x260   :  { %v255_v33 = vpop.f32.mrf.mxu0 }
 0x262   :  { %v320_v34 = vpop.f32.mrf.mxu0 }

</bundles_post_ra>
